<compile_context>
chip_gen: v6e
topology: v6e:2x2x1
jax: 0.10.0
libtpu: 0.0.40
codegen_flags: <defaults>
</compile_context>

<pallas_src>
import jax
import jax.numpy as jnp
from jax import lax
from jax.experimental import pallas as pl
from jax.experimental.pallas import tpu as pltpu


def _round_up(n, m):
    return ((n + m - 1) // m) * m


def _opl_kernel(i_idx_ref, j_idx_ref,          # scalar-prefetch tile schedule (SMEM)
                lab_i_ref, lab_j_ref,          # (tb,1) / (1,tb) int32 labels
                inv_i_ref, inv_j_ref,          # (tb,1) / (1,tb) f32 inverse norms
                xi_ref, xj_ref,                # (tb,tk) feature tiles
                out_ref,                       # (1,8,128) f32 per-pair partials
                gram_acc):                     # (tb,tb) f32 Gram accumulator
    t = pl.program_id(0)
    k = pl.program_id(1)
    nk = pl.num_programs(1)

    @pl.when(k == 0)
    def _():
        gram_acc[...] = jnp.zeros_like(gram_acc)

    # Un-normalized Gram tile on the MXU: contract the feature axis of BOTH
    # operands directly (transposed-RHS path, no explicit xj.T).
    gram_acc[...] += lax.dot_general(
        xi_ref[...], xj_ref[...],
        dimension_numbers=(((1,), (1,)), ((), ())),
        preferred_element_type=jnp.float32)

    # After the last feature chunk: normalize with the precomputed inverse
    # norms and fold the tile into the per-pair partial sums.
    @pl.when(k == nk - 1)
    def _():
        dot_n = gram_acc[...] * inv_i_ref[...] * inv_j_ref[...]     # cosine tile
        same = lab_i_ref[...] == lab_j_ref[...]                     # (tb,tb) bool
        s_same = jnp.sum(jnp.where(same, dot_n, 0.0))
        s_all = jnp.sum(dot_n)

        # Off-diagonal tile pairs stand in for their mirror image -> weight 2.
        w = jnp.where(i_idx_ref[t] == j_idx_ref[t],
                      jnp.float32(1.0), jnp.float32(2.0))
        s_same = s_same * w
        s_all = s_all * w

        # Lane-dense output row: sublane 0 <- sum(same*dot_n), sublane 1 <- sum(dot_n).
        sub = lax.broadcasted_iota(jnp.int32, out_ref.shape, 1)
        out_ref[...] = jnp.where(sub == 0, s_same,
                                 jnp.where(sub == 1, s_all, jnp.float32(0.0)))


def orthogonal_projection_loss(features, labels, gamma=0.5,
                               tb_max=512, tk_max=512):
    """features: (B, D) float array, labels: (B,) int array -> scalar loss."""
    B, D = features.shape
    x32 = features.astype(jnp.float32)

    # --- exact scalar quantities computed once in the wrapper -------------
    ssq = jnp.sum(x32 * x32, axis=1, keepdims=True)            # (B,1)
    # torch F.normalize semantics: x / max(||x||, 1e-12)
    inv = lax.rsqrt(jnp.maximum(ssq, 1e-24))                   # (B,1)
    trace = jnp.sum(ssq * inv * inv)                           # diag of cosine Gram
    lab = labels.astype(jnp.int32)
    same_cnt = jnp.sum((lab[:, None] == lab[None, :]).astype(jnp.int32)
                       ).astype(jnp.float32)

    # --- tiling + padding --------------------------------------------------
    tb = _round_up(B, 8)
    if tb > tb_max:
        tb = max(128, (tb_max // 128) * 128)   # multi-tile: keep lane-aligned
    tk = _round_up(D, 128)
    if tk > tk_max:
        tk = max(128, (tk_max // 128) * 128)
    Bp = _round_up(B, tb)
    Dp = _round_up(D, tk)
    ni = Bp // tb
    nk = Dp // tk

    x_pad = jnp.pad(features, ((0, Bp - B), (0, Dp - D)))
    inv_col = jnp.pad(inv, ((0, Bp - B), (0, 0)))              # padded rows -> 0
    inv_row = inv_col.reshape(1, Bp)
    lab_col = jnp.pad(lab.reshape(B, 1), ((0, Bp - B), (0, 0)), constant_values=-1)
    lab_row = lab_col.reshape(1, Bp)

    # Upper-triangular tile-pair schedule (scalar-prefetched into SMEM).
    pairs = [(i, j) for i in range(ni) for j in range(i, ni)]
    nt = len(pairs)
    i_idx = jnp.asarray([p[0] for p in pairs], dtype=jnp.int32)
    j_idx = jnp.asarray([p[1] for p in pairs], dtype=jnp.int32)

    partials = pl.pallas_call(
        _opl_kernel,
        out_shape=jax.ShapeDtypeStruct((nt, 8, 128), jnp.float32),
        grid_spec=pltpu.PrefetchScalarGridSpec(
            num_scalar_prefetch=2,
            grid=(nt, nk),
            in_specs=[
                pl.BlockSpec((tb, 1), lambda t, k, ii, jj: (ii[t], 0)),   # labels (rows)
                pl.BlockSpec((1, tb), lambda t, k, ii, jj: (0, jj[t])),   # labels (cols)
                pl.BlockSpec((tb, 1), lambda t, k, ii, jj: (ii[t], 0)),   # inv-norm (rows)
                pl.BlockSpec((1, tb), lambda t, k, ii, jj: (0, jj[t])),   # inv-norm (cols)
                pl.BlockSpec((tb, tk), lambda t, k, ii, jj: (ii[t], k)),  # X row tile
                pl.BlockSpec((tb, tk), lambda t, k, ii, jj: (jj[t], k)),  # X col tile
            ],
            out_specs=pl.BlockSpec((1, 8, 128), lambda t, k, ii, jj: (t, 0, 0)),
            scratch_shapes=[pltpu.VMEM((tb, tb), jnp.float32)],
        ),
        # Distinct output block per tile pair -> the t axis is race-free and
        # can shard across v7x's two TensorCores; k is the Gram reduction.
        compiler_params=pltpu.CompilerParams(
            dimension_semantics=("parallel", "arbitrary")),
    )(i_idx, j_idx, lab_col, lab_row, inv_col, inv_row, x_pad, x_pad)

    total_same = jnp.sum(partials[:, 0, 0])
    total_all = jnp.sum(partials[:, 1, 0])

    b = jnp.float32(B)
    pos_mean = (total_same - trace) / ((same_cnt - b) + 1e-6)
    neg_mean = (total_all - total_same) / ((b * b - same_cnt) + 1e-6)
    return 1.0 - pos_mean + gamma * neg_mean


def _reference(features, labels, gamma=0.5):
    # Pure-JAX reference mirroring the PyTorch module.
    x = features.astype(jnp.float32)
    x = x / jnp.maximum(jnp.linalg.norm(x, axis=1, keepdims=True), 1e-12)
    lab = labels[:, None]
    mask = (lab == lab.T)
    eye = jnp.eye(mask.shape[0], dtype=bool)
    mask_pos = jnp.where(eye, 0.0, mask.astype(jnp.float32))
    mask_neg = (~mask).astype(jnp.float32)
    dot = x @ x.T
    pos = jnp.sum(mask_pos * dot) / (jnp.sum(mask_pos) + 1e-6)
    neg = jnp.sum(mask_neg * dot) / (jnp.sum(mask_neg) + 1e-6)
    return 1.0 - pos + gamma * neg


if __name__ == "__main__":
    key = jax.random.PRNGKey(0)
    kf1, kl1, kf2, kl2 = jax.random.split(key, 4)

    # Small single-tile case.
    B, D = 8, 32
    features = jax.random.normal(kf1, (B, D), dtype=jnp.float32)
    labels = jax.random.randint(kl1, (B,), 0, 3, dtype=jnp.int32)
    loss = jax.block_until_ready(orthogonal_projection_loss(features, labels, gamma=0.5))
    ref = _reference(features, labels, gamma=0.5)
    # Tolerance covers TPU default matmul precision on the Gram.
    assert jnp.allclose(loss, ref, atol=3e-3, rtol=3e-3), (loss, ref)

    # Multi-tile case exercising padding + triangular tile pairs + 2x weighting.
    B2, D2 = 200, 200
    features2 = jax.random.normal(kf2, (B2, D2), dtype=jnp.float32)
    labels2 = jax.random.randint(kl2, (B2,), 0, 5, dtype=jnp.int32)
    loss2 = jax.block_until_ready(
        orthogonal_projection_loss(features2, labels2, gamma=0.5,
                                   tb_max=128, tk_max=128))
    ref2 = _reference(features2, labels2, gamma=0.5)
    assert jnp.allclose(loss2, ref2, atol=3e-3, rtol=3e-3), (loss2, ref2)

    print("KERNEL_OK")
</pallas_src>

<mosaic_0001>
module attributes {stable_mosaic.version = 11 : i64} {
  func.func @_opl_kernel(%arg0: i32, %arg1: i32, %arg2: memref<1xi32, #tpu.memory_space<smem>>, %arg3: memref<1xi32, #tpu.memory_space<smem>>, %arg4: memref<8x1xi32, #tpu.memory_space<vmem>>, %arg5: memref<1x8xi32, #tpu.memory_space<vmem>>, %arg6: memref<8x1xf32, #tpu.memory_space<vmem>>, %arg7: memref<1x8xf32, #tpu.memory_space<vmem>>, %arg8: memref<8x128xf32, #tpu.memory_space<vmem>>, %arg9: memref<8x128xf32, #tpu.memory_space<vmem>>, %arg10: memref<1x8x128xf32, #tpu.memory_space<vmem>>, %arg11: memref<8x8xf32, #tpu.memory_space<vmem>>) attributes {dimension_semantics = [#tpu.dimension_semantics<parallel>, #tpu.dimension_semantics<arbitrary>], iteration_bounds = array<i64: 1, 1>, scalar_prefetch = 2 : i64, scratch_operands = 1 : i64, tpu.core_type = #tpu.core_type<tc>, window_params = [{transform_indices = @transform_0, window_bounds = array<i64: 8, 1>}, {transform_indices = @transform_1, window_bounds = array<i64: 1, 8>}, {transform_indices = @transform_2, window_bounds = array<i64: 8, 1>}, {transform_indices = @transform_3, window_bounds = array<i64: 1, 8>}, {transform_indices = @transform_4, window_bounds = array<i64: 8, 128>}, {transform_indices = @transform_5, window_bounds = array<i64: 8, 128>}, {transform_indices = @transform_6, window_bounds = array<i64: 1, 8, 128>}]} {
    %c0_i32 = arith.constant 0 : i32
    %0 = arith.cmpi eq, %arg1, %c0_i32 : i32
    %1 = arith.extui %0 : i1 to i32
    %c0_i32_0 = arith.constant 0 : i32
    %2 = arith.cmpi ne, %1, %c0_i32_0 : i32
    scf.if %2 {
      %cst_10 = arith.constant 0.000000e+00 : f32
      %12 = vector.broadcast %cst_10 : f32 to vector<8x8xf32>
      %c0_11 = arith.constant 0 : index
      %c0_12 = arith.constant 0 : index
      %13 = vector.load %arg11[%c0_11, %c0_12] : memref<8x8xf32, #tpu.memory_space<vmem>>, vector<8x8xf32>
      tpu.vector_store %arg11[%c0_11, %c0_12], %12 {strides = array<i32>} : memref<8x8xf32, #tpu.memory_space<vmem>>, vector<8x8xf32>,
    } else {
    }
    %c0 = arith.constant 0 : index
    %c0_1 = arith.constant 0 : index
    %3 = vector.load %arg11[%c0, %c0_1] : memref<8x8xf32, #tpu.memory_space<vmem>>, vector<8x8xf32>
    %c0_2 = arith.constant 0 : index
    %c0_3 = arith.constant 0 : index
    %4 = vector.load %arg8[%c0_2, %c0_3] : memref<8x128xf32, #tpu.memory_space<vmem>>, vector<8x128xf32>
    %c0_4 = arith.constant 0 : index
    %c0_5 = arith.constant 0 : index
    %5 = vector.load %arg9[%c0_4, %c0_5] : memref<8x128xf32, #tpu.memory_space<vmem>>, vector<8x128xf32>
    %cst = arith.constant dense<0.000000e+00> : vector<8x8xf32>
    %6 = tpu.matmul %4, %5, %cst {dimension_numbers = #tpu.dot_dimension_numbers<[1], [1], [0], [0], [0, 0, 1, 0], [], []>} : vector<8x128xf32>, vector<8x128xf32>, vector<8x8xf32> -> vector<8x8xf32>
    %7 = arith.addf %3, %6 : vector<8x8xf32>
    %c0_6 = arith.constant 0 : index
    %c0_7 = arith.constant 0 : index
    %8 = vector.load %arg11[%c0_6, %c0_7] : memref<8x8xf32, #tpu.memory_space<vmem>>, vector<8x8xf32>
    tpu.vector_store %arg11[%c0_6, %c0_7], %7 {strides = array<i32>} : memref<8x8xf32, #tpu.memory_space<vmem>>, vector<8x8xf32>,
    %c0_i32_8 = arith.constant 0 : i32
    %9 = arith.cmpi eq, %arg1, %c0_i32_8 : i32
    %10 = arith.extui %9 : i1 to i32
    %c0_i32_9 = arith.constant 0 : i32
    %11 = arith.cmpi ne, %10, %c0_i32_9 : i32
    scf.if %11 {
      %c0_10 = arith.constant 0 : index
      %c0_11 = arith.constant 0 : index
      %12 = vector.load %arg11[%c0_10, %c0_11] : memref<8x8xf32, #tpu.memory_space<vmem>>, vector<8x8xf32>
      %c0_12 = arith.constant 0 : index
      %c0_13 = arith.constant 0 : index
      %13 = vector.load %arg6[%c0_12, %c0_13] : memref<8x1xf32, #tpu.memory_space<vmem>>, vector<8x1xf32>
      %14 = vector.broadcast %13 : vector<8x1xf32> to vector<8x8xf32>
      %15 = arith.mulf %12, %14 : vector<8x8xf32>
      %c0_14 = arith.constant 0 : index
      %c0_15 = arith.constant 0 : index
      %16 = vector.load %arg7[%c0_14, %c0_15] : memref<1x8xf32, #tpu.memory_space<vmem>>, vector<1x8xf32>
      %17 = vector.broadcast %16 : vector<1x8xf32> to vector<8x8xf32>
      %18 = arith.mulf %15, %17 : vector<8x8xf32>
      %c0_16 = arith.constant 0 : index
      %c0_17 = arith.constant 0 : index
      %19 = vector.load %arg4[%c0_16, %c0_17] : memref<8x1xi32, #tpu.memory_space<vmem>>, vector<8x1xi32>
      %c0_18 = arith.constant 0 : index
      %c0_19 = arith.constant 0 : index
      %20 = vector.load %arg5[%c0_18, %c0_19] : memref<1x8xi32, #tpu.memory_space<vmem>>, vector<1x8xi32>
      %21 = vector.broadcast %19 : vector<8x1xi32> to vector<8x8xi32>
      %22 = vector.broadcast %20 : vector<1x8xi32> to vector<8x8xi32>
      %23 = arith.cmpi eq, %21, %22 : vector<8x8xi32>
      %cst_20 = arith.constant 0.000000e+00 : f32
      %24 = vector.broadcast %cst_20 : f32 to vector<8x8xf32>
      %25 = arith.select %23, %18, %24 : vector<8x8xi1>, vector<8x8xf32>
      %26 = vector.shape_cast %25 : vector<8x8xf32> to vector<1x8x8xf32>
      %cst_21 = arith.constant dense<0.000000e+00> : vector<1xf32>
      %27 = vector.multi_reduction <add>, %26, %cst_21 [1, 2] : vector<1x8x8xf32> to vector<1xf32>
      %28 = vector.shape_cast %27 : vector<1xf32> to vector<1x1x1xf32>
      %29 = vector.extract %28[0, 0, 0] : f32 from vector<1x1x1xf32>
      %30 = vector.shape_cast %18 : vector<8x8xf32> to vector<1x8x8xf32>
      %cst_22 = arith.constant dense<0.000000e+00> : vector<1xf32>
      %31 = vector.multi_reduction <add>, %30, %cst_22 [1, 2] : vector<1x8x8xf32> to vector<1xf32>
      %32 = vector.shape_cast %31 : vector<1xf32> to vector<1x1x1xf32>
      %33 = vector.extract %32[0, 0, 0] : f32 from vector<1x1x1xf32>
      %34 = arith.index_cast %arg0 : i32 to index
      %35 = memref.load %arg2[%34] : memref<1xi32, #tpu.memory_space<smem>>
      %36 = arith.index_cast %arg0 : i32 to index
      %37 = memref.load %arg3[%36] : memref<1xi32, #tpu.memory_space<smem>>
      %38 = arith.cmpi eq, %35, %37 : i32
      %cst_23 = arith.constant 1.000000e+00 : f32
      %cst_24 = arith.constant 2.000000e+00 : f32
      %39 = arith.select %38, %cst_23, %cst_24 : f32
      %40 = arith.mulf %29, %39 : f32
      %41 = arith.mulf %33, %39 : f32
      %42 = tpu.iota {dimensions = array<i32: 1>} : vector<1x8x128xi32>
      %c0_i32_25 = arith.constant 0 : i32
      %43 = vector.broadcast %c0_i32_25 : i32 to vector<1x8x128xi32>
      %44 = arith.cmpi eq, %42, %43 : vector<1x8x128xi32>
      %c1_i32 = arith.constant 1 : i32
      %45 = vector.broadcast %c1_i32 : i32 to vector<1x8x128xi32>
      %46 = arith.cmpi eq, %42, %45 : vector<1x8x128xi32>
      %cst_26 = arith.constant 0.000000e+00 : f32
      %47 = vector.broadcast %41 : f32 to vector<1x8x128xf32>
      %48 = vector.broadcast %cst_26 : f32 to vector<1x8x128xf32>
      %49 = arith.select %46, %47, %48 : vector<1x8x128xi1>, vector<1x8x128xf32>
      %50 = vector.broadcast %40 : f32 to vector<1x8x128xf32>
      %51 = arith.select %44, %50, %49 : vector<1x8x128xi1>, vector<1x8x128xf32>
      %c0_27 = arith.constant 0 : index
      %c0_28 = arith.constant 0 : index
      %c0_29 = arith.constant 0 : index
      %52 = vector.load %arg10[%c0_27, %c0_28, %c0_29] : memref<1x8x128xf32, #tpu.memory_space<vmem>>, vector<1x8x128xf32>
      tpu.vector_store %arg10[%c0_27, %c0_28, %c0_29], %51 {strides = array<i32>} : memref<1x8x128xf32, #tpu.memory_space<vmem>>, vector<1x8x128xf32>,
    } else {
    }
    return
  }
  func.func @transform_0(%arg0: i32, %arg1: i32, %arg2: memref<1xi32, #tpu.memory_space<smem>>, %arg3: memref<1xi32, #tpu.memory_space<smem>>) -> (i32, i32) {
    %0 = arith.index_cast %arg0 : i32 to index
    %1 = memref.load %arg2[%0] : memref<1xi32, #tpu.memory_space<smem>>
    %c0_i32 = arith.constant 0 : i32
    %c0_i32_0 = arith.constant 0 : i32
    return %1, %c0_i32 : i32, i32
  }
  func.func @transform_1(%arg0: i32, %arg1: i32, %arg2: memref<1xi32, #tpu.memory_space<smem>>, %arg3: memref<1xi32, #tpu.memory_space<smem>>) -> (i32, i32) {
    %0 = arith.index_cast %arg0 : i32 to index
    %1 = memref.load %arg3[%0] : memref<1xi32, #tpu.memory_space<smem>>
    %c0_i32 = arith.constant 0 : i32
    %c0_i32_0 = arith.constant 0 : i32
    return %c0_i32, %1 : i32, i32
  }
  func.func @transform_2(%arg0: i32, %arg1: i32, %arg2: memref<1xi32, #tpu.memory_space<smem>>, %arg3: memref<1xi32, #tpu.memory_space<smem>>) -> (i32, i32) {
    %0 = arith.index_cast %arg0 : i32 to index
    %1 = memref.load %arg2[%0] : memref<1xi32, #tpu.memory_space<smem>>
    %c0_i32 = arith.constant 0 : i32
    %c0_i32_0 = arith.constant 0 : i32
    return %1, %c0_i32 : i32, i32
  }
  func.func @transform_3(%arg0: i32, %arg1: i32, %arg2: memref<1xi32, #tpu.memory_space<smem>>, %arg3: memref<1xi32, #tpu.memory_space<smem>>) -> (i32, i32) {
    %0 = arith.index_cast %arg0 : i32 to index
    %1 = memref.load %arg3[%0] : memref<1xi32, #tpu.memory_space<smem>>
    %c0_i32 = arith.constant 0 : i32
    %c0_i32_0 = arith.constant 0 : i32
    return %c0_i32, %1 : i32, i32
  }
  func.func @transform_4(%arg0: i32, %arg1: i32, %arg2: memref<1xi32, #tpu.memory_space<smem>>, %arg3: memref<1xi32, #tpu.memory_space<smem>>) -> (i32, i32) {
    %0 = arith.index_cast %arg0 : i32 to index
    %1 = memref.load %arg2[%0] : memref<1xi32, #tpu.memory_space<smem>>
    %c0_i32 = arith.constant 0 : i32
    return %1, %arg1 : i32, i32
  }
  func.func @transform_5(%arg0: i32, %arg1: i32, %arg2: memref<1xi32, #tpu.memory_space<smem>>, %arg3: memref<1xi32, #tpu.memory_space<smem>>) -> (i32, i32) {
    %0 = arith.index_cast %arg0 : i32 to index
    %1 = memref.load %arg3[%0] : memref<1xi32, #tpu.memory_space<smem>>
    %c0_i32 = arith.constant 0 : i32
    return %1, %arg1 : i32, i32
  }
  func.func @transform_6(%arg0: i32, %arg1: i32, %arg2: memref<1xi32, #tpu.memory_space<smem>>, %arg3: memref<1xi32, #tpu.memory_space<smem>>) -> (i32, i32, i32) {
    %c0_i32 = arith.constant 0 : i32
    %c0_i32_0 = arith.constant 0 : i32
    %c0_i32_1 = arith.constant 0 : i32
    return %arg0, %c0_i32, %c0_i32_0 : i32, i32, i32
  }
}

</mosaic_0001>

<bundles_post_ra>
// kernel: tpu_custom_call.1
= control target key start
LH: loop header
LB: loop body
LE: loop exit
PB: predicated region body
PF: predicated region fallthrough
CT: control target
= control target key end

     0   :  { %vm128_vm0 = vcmask 64512   ;;  %v359_v0 = vmov 0.0   ;;  %vm360_vm1 = vmmov 0   ;;  %s456_s0 = inlined_call_operand.<no memory space> [shape: s32[1], index: 0, kind: input, shape index: {}]   ;;  %s457_s1 = inlined_call_operand.<no memory space> [shape: s32[1], index: 1, kind: input, shape index: {}]   ;;  %s458_s2 = inlined_call_operand.vmem [shape: s32[8,1], index: 2, kind: input, shape index: {}]   ;;  %s459_s3 = inlined_call_operand.vmem [shape: s32[1,8], index: 3, kind: input, shape index: {}]   ;;  %s460_s4 = inlined_call_operand.vmem [shape: f32[8,1], index: 4, kind: input, shape index: {}]   ;;  %s461_s5 = inlined_call_operand.vmem [shape: f32[1,8], index: 5, kind: input, shape index: {}]   ;;  %s462_s6 = inlined_call_operand.vmem [shape: f32[8,128], index: 6, kind: input, shape index: {}]   ;;  %s463_s7 = inlined_call_operand.vmem [shape: f32[8,128], index: 7, kind: input, shape index: {}]   ;;  %s464_s8 = inlined_call_operand.hbm [shape: f32[1,8,128], index: 8, kind: output, shape index: {}]  }
   0x1   :  { %p97_p0 = scmp.lt.s32.totalorder %s457_s1, 0  ;;  %p91_p1 = scmp.lt.s32.totalorder %s456_s0, 0  ;;  %323 = vmatprep.subr.mxu0 %v359_v0  ;;  %325 = vmatprep.mubr.msk.f32.mxu0 %vm360_vm1, %v359_v0  ;;  %129 = vst.msk [vmem:[#allocation2] sm:$0xff] %vm128_vm0, %v359_v0 }
   0x2   :  { %15 = vsyncpa [#allocation7], 0  ;;  %v361_v1 = vmov 0   ;;  %p258_p2 = scmp.eq.s32.totalorder %s456_s0, %s457_s1  ;;  %v262_v34 = vlaneseq  ;;  %s362_s16 = smov [#allocation6]  }
   0x3   :  { %s418_s11 = scalar_select %p97_p0, %s457_s1, 0  ;;  %336 = vset.pattern.permute.xlu0 %v361_v1 }
   0x4   :  { %s92_s14 = scalar_select %p91_p1, %s456_s0, 0  ;;  %v263_v35 = vshrl.u32 %v262_v34, 7 }
   0x5   :  { %s318_s15 = sshll.u32 %s418_s11, 3  ;;  %s99_s9 = scalar_lea.vmem %s459_s3, %s418_s11 }
   0x6   :  { %s122_s18 = scalar_lea.vmem %s463_s7, %s318_s15  ;;  %s315_s19 = sshll.u32 %s92_s14, 3  ;;  %v320_v14 = vld [vmem:[%s99_s9] ss:$0 sm:$0xff]  ;;  %vm265_vm3 = vcmp.eq.s32.totalorder %v263_v35, 1  ;;  %vm264_vm4 = vcmp.eq.s32.totalorder %v263_v35, 0 }
   0x7   :  { %v132_v2 = vld [vmem:[%s122_s18] sm:$0xff]  ;;  %s116_s22 = scalar_lea.vmem %s462_s6, %s315_s19  ;;  %s105_s25 = scalar_lea.vmem %s460_s4, %s315_s19 }
   0x8   :  { %324 = vmatpush3.xpose.msra.mxu0 %v132_v2  ;;  %v131_v3 = vld [vmem:[%s116_s22] sm:$0xff]  ;;  %s94_s28 = scalar_lea.vmem %s458_s2, %s315_s19  ;;  %s110_s7 = scalar_lea.vmem %s461_s5, %s418_s11 }
   0x9   :  { %v210_v4 = vld [vmem:[%s105_s25] sm:$0xff]  ;;  %s259_s11 = scalar_select %p258_p2, 1.0, 2.0 }
   0xa   :  { %213 = vperm.xlu0 %336, %v210_v4   ;;  %v225_v5 = vld [vmem:[%s94_s28] sm:$0xff]  ;;  %s277_s17 = sshll.u32 %s362_s16, 4  ;;  %s278_s17 = int_to_ptr.vmem [resolvable:$true] %s277_s17 }
   0xb   :  { %326 = vmatmul.mubr.f32.vlgmr.msra.gmra.mxu0 %v131_v3  ;;  %v130_v6 = vld [vmem:[#allocation2] sm:$0xff]  ;;  %s337_s18 = scalar_lea.vmem %s278_s17, 128  ;;  %p342_p4 = scmp.lt.s32.totalorder %s278_s17, %s278_s17 }
   0xc   :  { %v319_v12 = vld [vmem:[%s110_s7] ss:$0 sm:$0xff]  ;;  %p338_p3 = scmp.ne.s32.totalorder %s278_s17, %s337_s18  ;;  %p343_p5 = scmp.lt.s32.totalorder %s337_s18, %s337_s18 }
   0xe   :  { %228 = vperm.xlu0 %336, %v225_v5   ;;  %p344_p6 = por %p343_p5, %p342_p4 }
  0x10   :  { %p345_p7 = pnand %p344_p6, %p338_p3 }
  0x85   :  { %v214_v10 = vpop.permute.xlu0 %213 }
  0x89   :  { %v229_v15 = vpop.permute.xlu0 %228 }
  0x8a   :  { %vm234_vm2 = vcmp.eq.s32.totalorder %v229_v15, %v320_v14 }
  0xcb   :  { %v199_v7 = vpop.f32.mrf.mxu0 }
  0xcc   :  { %v203_v8 = vadd.f32 %v199_v7, %v130_v6 }
  0xcd   :  { %v327_v9 = vpop.f32.mrf.mxu0 }
  0xce   :  { %205 = vst.msk [vmem:[#allocation2] sm:$0xff] %vm128_vm0, %v203_v8 }
  0xd5   :  { %v209_v11 = vld [vmem:[#allocation2] sm:$0xff] }
  0xd6   :  { %v216_v13 = vmul.f32 %v214_v10, %v209_v11 }
  0xd8   :  { %v224_v16 = vmul.f32 %v319_v12, %v216_v13 }
  0xda   :  { %v235_v17 = vsel %vm234_vm2, %v224_v16, 0.0  ;;  %v246_v19 = vsel %vm128_vm0, %v224_v16, 0.0 }
  0xdb   :  { %v236_v18 = vsel %vm128_vm0, %v235_v17, 0.0 }
  0xdc   :  { %237 = vadd.xlane.f32.xlu1 %v236_v18 }
  0xe0   :  { %247 = vadd.xlane.f32.xlu1 %v246_v19 }
 0x165   :  { %v238_v20 = vpop.xlane.xlu1 %237 }
 0x166   :  { %v239_v21 = vrot.slane %v238_v20, 4 }
 0x168   :  { %v240_v22 = vadd.f32 %v239_v21, %v238_v20 }
 0x169   :  { %v248_v23 = vpop.xlane.xlu1 %247 }
 0x16a   :  { %v241_v24 = vrot.slane %v240_v22, 2  ;;  %v249_v25 = vrot.slane %v248_v23, 4 }
 0x16c   :  { %v250_v26 = vadd.f32 %v249_v25, %v248_v23  ;;  %v242_v27 = vadd.f32 %v241_v24, %v240_v22 }
 0x16e   :  { %v251_v28 = vrot.slane %v250_v26, 2  ;;  %v243_v29 = vrot.slane %v242_v27, 1 }
 0x170   :  { %v252_v30 = vadd.f32 %v251_v28, %v250_v26  ;;  %v244_v31 = vadd.f32 %v243_v29, %v242_v27 }
 0x172   :  { %328 = vpush %v244_v31  ;;  %v253_v32 = vrot.slane %v252_v30, 1 }
 0x174   :  { %v254_v33 = vadd.f32 %v253_v32, %v252_v30 }
 0x176   :  { %330 = vpush %v254_v33 }
 0x1a3   :  { %s329_s12 = spop %328 }
 0x1a4   :  { %s260_s13 = smul.f32 %s329_s12, %s259_s11 }
 0x1a6   :  { %v268_v37 = vstv %s260_s13 }
 0x1a7   :  { %s331_s14 = spop %330 }
 0x1a8   :  { %s261_s15 = smul.f32 %s331_s14, %s259_s11 }
 0x1aa   :  { %v266_v36 = vstv %s261_s15 }
 0x1ab   :  { %v267_v38 = vsel %vm265_vm3, %v266_v36, 0.0 }
 0x1ac   :  { %v269_v39 = vsel %vm264_vm4, %v268_v37, %v267_v38 }
 0x1ad   :  { %270 = vst [vmem:[#allocation6] sm:$0xff] %v269_v39 }
 0x1ae   :  { %348 = shalt.err (!%p345_p7)
}
 0x1af   :  { %280 = dma.vmem_to_hbm [thread:$0]  %s278_s17, 128, %s464_s8, [#allocation7]  }
 0x1b0   :  { %357 = dma.done.wait [#allocation7], 128  }
 0x1b1   :  { %358 = vsyncadd [#allocation7], 4294967168 }
 0x1b2   :  { %284 = vsyncpa [#allocation7], 1 }

</bundles_post_ra>
